<compile_context>
chip_gen: v6e
topology: v6e:2x2x1
jax: 0.10.0
libtpu: 0.0.40
codegen_flags: <defaults>
</compile_context>

<pallas_src>
import functools
import math

import jax
import jax.numpy as jnp
from jax.experimental import pallas as pl
from jax.experimental.pallas import tpu as pltpu


def cnmp_kernel(ctx_ref, qry_ref, wpack_ref, whead_ref, out_ref, *,
                hidden, d_y, w2_off, inv_n_ctx):
    f32 = jnp.float32
    ctx = ctx_ref[...]                       # [n_ctx, d_x + d_y]
    q = qry_ref[...]                         # [n_q,  d_x]
    d_xy = ctx.shape[1]
    d_x = q.shape[1]
    H = hidden
    b_off = d_xy + d_x

    # Static, mostly tile-aligned views into the packed weight slab.
    w1 = wpack_ref[0:d_xy, :]                # [d_x+d_y, H]
    w3q = wpack_ref[d_xy:b_off, :]           # [d_x, H]
    b1 = wpack_ref[b_off:b_off + 1, :]       # [1, H]
    b2 = wpack_ref[b_off + 1:b_off + 2, :]
    b3 = wpack_ref[b_off + 2:b_off + 3, :]
    w2 = wpack_ref[w2_off:w2_off + H, :]                 # [H, H]  (8-aligned)
    w3r = wpack_ref[w2_off + H:w2_off + 2 * H, :]        # [H, H]  (8-aligned)

    # ---- encoder (both layers on the MXU; biases/ReLU on the VPU) -----------
    h = jnp.maximum(jnp.dot(ctx, w1, preferred_element_type=f32) + b1, 0.0)
    h = jnp.maximum(jnp.dot(h, w2, preferred_element_type=f32) + b2, 0.0)

    # ---- mean-pool over the context set (in-kernel scale: weights stay
    #      n_ctx-invariant; matches the reference post-pool divide) -----------
    r = jnp.sum(h, axis=0, keepdims=True) * inv_n_ctx    # [1, H]

    # ---- decoder layer 1: r-part and q-part as two MXU passes ---------------
    h2 = (jnp.dot(r, w3r, preferred_element_type=f32)
          + jnp.dot(q, w3q, preferred_element_type=f32) + b3)
    h2 = jnp.maximum(h2, 0.0)                            # [n_q, H]

    # ---- head: w4/b4 padded to 128 lanes -> lane-dense output store ---------
    w4 = whead_ref[0:H, :]                               # [H, 128]
    b4 = whead_ref[H:H + 1, :]                           # [1, 128]
    out = jnp.dot(h2, w4, preferred_element_type=f32) + b4   # [n_q, 128]

    # softplus(log_std) + 1e-6 on the std lanes only (d_y <= col), stable
    # single-branch form; padded lanes (>= 2*d_y) are sliced off by the wrapper.
    col = jax.lax.broadcasted_iota(jnp.int32, out.shape, dimension=1)
    sp = jnp.maximum(out, 0.0) + jnp.log1p(jnp.exp(-jnp.abs(out))) + 1e-6
    out_ref[...] = jnp.where(col >= d_y, sp, out).astype(out_ref.dtype)


def init_cnmp_params(key, d_x, d_y, hidden_size):
    """Deterministic init mimicking torch.nn.Linear (U(-1/sqrt(fan_in), +))."""
    def linear(k, fan_in, fan_out):
        kw, kb = jax.random.split(k)
        bound = 1.0 / math.sqrt(fan_in)
        w = jax.random.uniform(kw, (fan_in, fan_out), jnp.float32, -bound, bound)
        b = jax.random.uniform(kb, (1, fan_out), jnp.float32, -bound, bound)
        return w, b

    k1, k2, k3, k4 = jax.random.split(key, 4)
    w1, b1 = linear(k1, d_x + d_y, hidden_size)            # encoder.0
    w2, b2 = linear(k2, hidden_size, hidden_size)          # encoder.2
    w3, b3 = linear(k3, hidden_size + d_x, hidden_size)    # decoder.0
    w4, b4 = linear(k4, hidden_size, 2 * d_y)              # decoder.2
    return dict(w1=w1, b1=b1, w2=w2, b2=b2, w3=w3, b3=b3, w4=w4, b4=b4)


def pack_cnmp_params(params, d_x, d_y, hidden_size, out_lanes=128):
    """One-time packing (NOT in the per-call path)."""
    H = hidden_size
    d_xy = d_x + d_y
    small_rows = d_xy + d_x + 3                       # w1 | w3_q | b1 | b2 | b3
    w2_off = pl.cdiv(small_rows, 8) * 8               # align [H,H] slabs to 8 rows

    wpack = jnp.zeros((w2_off + 2 * H, H), jnp.float32)
    wpack = wpack.at[0:d_xy].set(params["w1"])
    wpack = wpack.at[d_xy:d_xy + d_x].set(params["w3"][H:])          # w3_q
    wpack = wpack.at[d_xy + d_x].set(params["b1"][0])
    wpack = wpack.at[d_xy + d_x + 1].set(params["b2"][0])
    wpack = wpack.at[d_xy + d_x + 2].set(params["b3"][0])
    wpack = wpack.at[w2_off:w2_off + H].set(params["w2"])
    wpack = wpack.at[w2_off + H:w2_off + 2 * H].set(params["w3"][:H])  # w3_r

    out_lanes = max(out_lanes, 2 * d_y)               # lane-dense head output
    head_rows = pl.cdiv(H + 1, 8) * 8
    whead = jnp.zeros((head_rows, out_lanes), jnp.float32)
    whead = whead.at[0:H, 0:2 * d_y].set(params["w4"])
    whead = whead.at[H, 0:2 * d_y].set(params["b4"][0])

    return dict(wpack=wpack, whead=whead, w2_off=w2_off)


def cnmp_forward(packed, context, query, d_x, d_y, hidden_size):
    """Batched forward: context [B, n_ctx, d_x+d_y], query [B, n_q, d_x]."""
    B, n_ctx, d_xy = context.shape
    _, n_q, _ = query.shape
    wpack, whead = packed["wpack"], packed["whead"]
    out_lanes = whead.shape[1]

    kernel = functools.partial(
        cnmp_kernel, hidden=hidden_size, d_y=d_y,
        w2_off=packed["w2_off"], inv_n_ctx=1.0 / n_ctx)

    out = pl.pallas_call(
        kernel,
        out_shape=jax.ShapeDtypeStruct((B, n_q, out_lanes), jnp.float32),
        grid=(B,),
        in_specs=[
            # per-problem tiles (leading batch dim squeezed out of the kernel refs)
            pl.BlockSpec((None, n_ctx, d_xy), lambda b: (b, 0, 0)),
            pl.BlockSpec((None, n_q, d_x), lambda b: (b, 0, 0)),
            # weights: constant index_map -> resident in VMEM across grid steps
            pl.BlockSpec(wpack.shape, lambda b: (0, 0)),
            pl.BlockSpec(whead.shape, lambda b: (0, 0)),
        ],
        out_specs=pl.BlockSpec((None, n_q, out_lanes), lambda b: (b, 0, 0)),
        compiler_params=pltpu.CompilerParams(
            dimension_semantics=("parallel",)),   # shards batch across v7x's 2 TCs
    )(context, query, wpack, whead)

    mean = out[:, :, :d_y]
    std = out[:, :, d_y:2 * d_y]
    return mean, std


def cnmp_reference(params, context, query, d_y):
    """Pure-JAX reference matching the PyTorch forward exactly (vmapped over B)."""
    def one(ctx, q):
        h = jnp.maximum(ctx @ params["w1"] + params["b1"], 0.0)
        h = jnp.maximum(h @ params["w2"] + params["b2"], 0.0)
        r = jnp.mean(h, axis=0, keepdims=True)
        r = jnp.broadcast_to(r, (q.shape[0], r.shape[1]))
        out = jnp.maximum(
            jnp.concatenate([r, q], axis=1) @ params["w3"] + params["b3"], 0.0)
        out = out @ params["w4"] + params["b4"]
        mean, log_std = out[:, :d_y], out[:, d_y:]
        return mean, jax.nn.softplus(log_std) + 1e-6
    return jax.vmap(one)(context, query)


if __name__ == "__main__":
    d_x, d_y, hidden_size = 2, 2, 32
    B, n_ctx, n_q = 4, 8, 8

    key = jax.random.PRNGKey(0)
    k_params, k_ctx, k_qry = jax.random.split(key, 3)

    params = init_cnmp_params(k_params, d_x, d_y, hidden_size)
    packed = pack_cnmp_params(params, d_x, d_y, hidden_size)     # once, off the hot path

    context = jax.random.normal(k_ctx, (B, n_ctx, d_x + d_y), jnp.float32)
    query = jax.random.normal(k_qry, (B, n_q, d_x), jnp.float32)

    mean, std = cnmp_forward(packed, context, query, d_x, d_y, hidden_size)
    jax.block_until_ready((mean, std))

    mean_ref, std_ref = cnmp_reference(params, context, query, d_y)
    assert mean.shape == (B, n_q, d_y) and std.shape == (B, n_q, d_y)
    assert jnp.allclose(mean, mean_ref, atol=1e-5, rtol=1e-5), "mean mismatch"
    assert jnp.allclose(std, std_ref, atol=1e-5, rtol=1e-5), "std mismatch"

    print("KERNEL_OK")
</pallas_src>

<mosaic_0001>
module attributes {stable_mosaic.version = 11 : i64} {
  func.func @cnmp_kernel(%arg0: i32, %arg1: memref<1x8x4xf32, #tpu.memory_space<vmem>>, %arg2: memref<1x8x2xf32, #tpu.memory_space<vmem>>, %arg3: memref<80x32xf32, #tpu.memory_space<vmem>>, %arg4: memref<40x128xf32, #tpu.memory_space<vmem>>, %arg5: memref<1x8x128xf32, #tpu.memory_space<vmem>>) attributes {dimension_semantics = [#tpu.dimension_semantics<parallel>], iteration_bounds = array<i64: 4>, scalar_prefetch = 0 : i64, scratch_operands = 0 : i64, tpu.core_type = #tpu.core_type<tc>, window_params = [{transform_indices = @transform_0, window_bounds = array<i64: 1, 8, 4>}, {transform_indices = @transform_1, window_bounds = array<i64: 1, 8, 2>}, {pipeline_mode = #tpu.pipeline_mode<synchronous>, transform_indices = @transform_2, window_bounds = array<i64: 80, 32>}, {pipeline_mode = #tpu.pipeline_mode<synchronous>, transform_indices = @transform_3, window_bounds = array<i64: 40, 128>}, {transform_indices = @transform_4, window_bounds = array<i64: 1, 8, 128>}]} {
    %c0 = arith.constant 0 : index
    %c0_0 = arith.constant 0 : index
    %c0_1 = arith.constant 0 : index
    %0 = vector.load %arg1[%c0, %c0_0, %c0_1] : memref<1x8x4xf32, #tpu.memory_space<vmem>>, vector<1x8x4xf32>
    %1 = vector.shape_cast %0 : vector<1x8x4xf32> to vector<8x4xf32>
    %c0_2 = arith.constant 0 : index
    %c0_3 = arith.constant 0 : index
    %c0_4 = arith.constant 0 : index
    %2 = vector.load %arg2[%c0_2, %c0_3, %c0_4] : memref<1x8x2xf32, #tpu.memory_space<vmem>>, vector<1x8x2xf32>
    %3 = vector.shape_cast %2 : vector<1x8x2xf32> to vector<8x2xf32>
    %c0_5 = arith.constant 0 : index
    %c0_6 = arith.constant 0 : index
    %4 = vector.load %arg3[%c0_5, %c0_6] : memref<80x32xf32, #tpu.memory_space<vmem>>, vector<4x32xf32>
    %c4 = arith.constant 4 : index
    %c0_7 = arith.constant 0 : index
    %5 = vector.load %arg3[%c4, %c0_7] : memref<80x32xf32, #tpu.memory_space<vmem>>, vector<2x32xf32>
    %c6 = arith.constant 6 : index
    %c0_8 = arith.constant 0 : index
    %6 = vector.load %arg3[%c6, %c0_8] : memref<80x32xf32, #tpu.memory_space<vmem>>, vector<1x32xf32>
    %c7 = arith.constant 7 : index
    %c0_9 = arith.constant 0 : index
    %7 = vector.load %arg3[%c7, %c0_9] : memref<80x32xf32, #tpu.memory_space<vmem>>, vector<1x32xf32>
    %c8 = arith.constant 8 : index
    %c0_10 = arith.constant 0 : index
    %8 = vector.load %arg3[%c8, %c0_10] : memref<80x32xf32, #tpu.memory_space<vmem>>, vector<1x32xf32>
    %c16 = arith.constant 16 : index
    %c0_11 = arith.constant 0 : index
    %9 = vector.load %arg3[%c16, %c0_11] : memref<80x32xf32, #tpu.memory_space<vmem>>, vector<32x32xf32>
    %c48 = arith.constant 48 : index
    %c0_12 = arith.constant 0 : index
    %10 = vector.load %arg3[%c48, %c0_12] : memref<80x32xf32, #tpu.memory_space<vmem>>, vector<32x32xf32>
    %cst = arith.constant dense<0.000000e+00> : vector<8x32xf32>
    %11 = tpu.matmul %1, %4, %cst {dimension_numbers = #tpu.dot_dimension_numbers<[1], [0], [0], [1], [0, 0, 1, 1], [], []>} : vector<8x4xf32>, vector<4x32xf32>, vector<8x32xf32> -> vector<8x32xf32>
    %12 = vector.broadcast %6 : vector<1x32xf32> to vector<8x32xf32>
    %13 = arith.addf %11, %12 : vector<8x32xf32>
    %cst_13 = arith.constant 0.000000e+00 : f32
    %14 = vector.broadcast %cst_13 : f32 to vector<8x32xf32>
    %15 = arith.maximumf %13, %14 : vector<8x32xf32>
    %cst_14 = arith.constant dense<0.000000e+00> : vector<8x32xf32>
    %16 = tpu.matmul %15, %9, %cst_14 {dimension_numbers = #tpu.dot_dimension_numbers<[1], [0], [0], [1], [0, 0, 1, 1], [], []>} : vector<8x32xf32>, vector<32x32xf32>, vector<8x32xf32> -> vector<8x32xf32>
    %17 = vector.broadcast %7 : vector<1x32xf32> to vector<8x32xf32>
    %18 = arith.addf %16, %17 : vector<8x32xf32>
    %cst_15 = arith.constant 0.000000e+00 : f32
    %19 = vector.broadcast %cst_15 : f32 to vector<8x32xf32>
    %20 = arith.maximumf %18, %19 : vector<8x32xf32>
    %cst_16 = arith.constant dense<0.000000e+00> : vector<32xf32>
    %21 = vector.multi_reduction <add>, %20, %cst_16 [0] : vector<8x32xf32> to vector<32xf32>
    %22 = vector.shape_cast %21 : vector<32xf32> to vector<1x32xf32>
    %cst_17 = arith.constant 1.250000e-01 : f32
    %23 = vector.broadcast %cst_17 : f32 to vector<1x32xf32>
    %24 = arith.mulf %22, %23 : vector<1x32xf32>
    %cst_18 = arith.constant dense<0.000000e+00> : vector<1x32xf32>
    %25 = tpu.matmul %24, %10, %cst_18 {dimension_numbers = #tpu.dot_dimension_numbers<[1], [0], [0], [1], [0, 0, 1, 1], [], []>} : vector<1x32xf32>, vector<32x32xf32>, vector<1x32xf32> -> vector<1x32xf32>
    %cst_19 = arith.constant dense<0.000000e+00> : vector<8x32xf32>
    %26 = tpu.matmul %3, %5, %cst_19 {dimension_numbers = #tpu.dot_dimension_numbers<[1], [0], [0], [1], [0, 0, 1, 1], [], []>} : vector<8x2xf32>, vector<2x32xf32>, vector<8x32xf32> -> vector<8x32xf32>
    %27 = vector.broadcast %25 : vector<1x32xf32> to vector<8x32xf32>
    %28 = arith.addf %27, %26 : vector<8x32xf32>
    %29 = vector.broadcast %8 : vector<1x32xf32> to vector<8x32xf32>
    %30 = arith.addf %28, %29 : vector<8x32xf32>
    %cst_20 = arith.constant 0.000000e+00 : f32
    %31 = vector.broadcast %cst_20 : f32 to vector<8x32xf32>
    %32 = arith.maximumf %30, %31 : vector<8x32xf32>
    %c0_21 = arith.constant 0 : index
    %c0_22 = arith.constant 0 : index
    %33 = vector.load %arg4[%c0_21, %c0_22] : memref<40x128xf32, #tpu.memory_space<vmem>>, vector<32x128xf32>
    %c32 = arith.constant 32 : index
    %c0_23 = arith.constant 0 : index
    %34 = vector.load %arg4[%c32, %c0_23] : memref<40x128xf32, #tpu.memory_space<vmem>>, vector<1x128xf32>
    %cst_24 = arith.constant dense<0.000000e+00> : vector<8x128xf32>
    %35 = tpu.matmul %32, %33, %cst_24 {dimension_numbers = #tpu.dot_dimension_numbers<[1], [0], [0], [1], [0, 0, 1, 1], [], []>} : vector<8x32xf32>, vector<32x128xf32>, vector<8x128xf32> -> vector<8x128xf32>
    %36 = vector.broadcast %34 : vector<1x128xf32> to vector<8x128xf32>
    %37 = arith.addf %35, %36 : vector<8x128xf32>
    %38 = tpu.iota {dimensions = array<i32: 1>} : vector<8x128xi32>
    %cst_25 = arith.constant 0.000000e+00 : f32
    %39 = vector.broadcast %cst_25 : f32 to vector<8x128xf32>
    %40 = arith.maximumf %37, %39 : vector<8x128xf32>
    %41 = math.absf %37 : vector<8x128xf32>
    %cst_26 = arith.constant 0.000000e+00 : f32
    %42 = vector.broadcast %cst_26 : f32 to vector<8x128xf32>
    %43 = arith.subf %42, %41 : vector<8x128xf32>
    %44 = math.exp %43 : vector<8x128xf32>
    %45 = math.log1p %44 : vector<8x128xf32>
    %46 = arith.addf %40, %45 : vector<8x128xf32>
    %cst_27 = arith.constant 9.99999997E-7 : f32
    %47 = vector.broadcast %cst_27 : f32 to vector<8x128xf32>
    %48 = arith.addf %46, %47 : vector<8x128xf32>
    %c2_i32 = arith.constant 2 : i32
    %49 = vector.broadcast %c2_i32 : i32 to vector<8x128xi32>
    %50 = arith.cmpi sge, %38, %49 : vector<8x128xi32>
    %51 = arith.select %50, %48, %37 : vector<8x128xi1>, vector<8x128xf32>
    %c0_28 = arith.constant 0 : index
    %c0_29 = arith.constant 0 : index
    %c0_30 = arith.constant 0 : index
    %52 = vector.load %arg5[%c0_28, %c0_29, %c0_30] : memref<1x8x128xf32, #tpu.memory_space<vmem>>, vector<1x8x128xf32>
    %53 = vector.shape_cast %52 : vector<1x8x128xf32> to vector<8x128xf32>
    %54 = vector.shape_cast %51 : vector<8x128xf32> to vector<1x8x128xf32>
    tpu.vector_store %arg5[%c0_28, %c0_29, %c0_30], %54 {strides = array<i32>} : memref<1x8x128xf32, #tpu.memory_space<vmem>>, vector<1x8x128xf32>,
    return
  }
  func.func @transform_0(%arg0: i32) -> (i32, i32, i32) {
    %c0_i32 = arith.constant 0 : i32
    %c0_i32_0 = arith.constant 0 : i32
    %c0_i32_1 = arith.constant 0 : i32
    return %arg0, %c0_i32, %c0_i32_0 : i32, i32, i32
  }
  func.func @transform_1(%arg0: i32) -> (i32, i32, i32) {
    %c0_i32 = arith.constant 0 : i32
    %c0_i32_0 = arith.constant 0 : i32
    %c0_i32_1 = arith.constant 0 : i32
    return %arg0, %c0_i32, %c0_i32_0 : i32, i32, i32
  }
  func.func @transform_2(%arg0: i32) -> (i32, i32) {
    %c0_i32 = arith.constant 0 : i32
    %c0_i32_0 = arith.constant 0 : i32
    %c0_i32_1 = arith.constant 0 : i32
    return %c0_i32, %c0_i32_0 : i32, i32
  }
  func.func @transform_3(%arg0: i32) -> (i32, i32) {
    %c0_i32 = arith.constant 0 : i32
    %c0_i32_0 = arith.constant 0 : i32
    %c0_i32_1 = arith.constant 0 : i32
    return %c0_i32, %c0_i32_0 : i32, i32
  }
  func.func @transform_4(%arg0: i32) -> (i32, i32, i32) {
    %c0_i32 = arith.constant 0 : i32
    %c0_i32_0 = arith.constant 0 : i32
    %c0_i32_1 = arith.constant 0 : i32
    return %arg0, %c0_i32, %c0_i32_0 : i32, i32, i32
  }
}

</mosaic_0001>

<bundles_post_ra>
// kernel: tpu_custom_call.1
= control target key start
LH: loop header
LB: loop body
LE: loop exit
PB: predicated region body
PF: predicated region fallthrough
CT: control target
= control target key end

     0   :  { %9 = vsyncpa [#allocation3], 0  ;;  %s1149_s0 = inlined_call_operand.vmem [shape: f32[4,8,4], index: 0, kind: input, shape index: {}]   ;;  %s1150_s1 = inlined_call_operand.vmem [shape: f32[4,8,2], index: 1, kind: input, shape index: {}]   ;;  %s1151_s2 = inlined_call_operand.vmem [shape: f32[80,32], index: 2, kind: input, shape index: {}]   ;;  %s1152_s3 = inlined_call_operand.vmem [shape: f32[40,128], index: 3, kind: input, shape index: {}]   ;;  %s1153_s4 = inlined_call_operand.hbm [shape: f32[4,8,128], index: 4, kind: output, shape index: {}]  }
   0x1   :  { %11 = vsyncpa [#allocation3 + $0x1], 0  ;;  %s964_s15 = smov 0   ;;  %s966_s16 = smov 0  }
   0x2   :  { %s968_s17 = smov 0   ;;  %s970_s18 = smov 0  }
   0x3 LB: > { %s985_s19 = sadd.s32 4294967295, %s934_s18   ;;  %s745_s20 = sadd.s32 4294967294, %s934_s18   ;;  %s934_s18 = sphi %s970_s18, %s1159_s18   ;;  %s930_s17 = sphi %s968_s17, %s1158_s17   ;;  %s926_s16 = sphi %s966_s16, %s1157_s16   ;;  %s922_s15 = sphi %s964_s15, %s1156_s15  }
   0x4   : > { %s989_s21 = sadd.s32 1, %s934_s18   ;;  %s118_s22 = sadd.s32 1, %s930_s17 }
   0x5   : > { %s115_s23 = ssub.s32 %s934_s18, %s989_s21  ;;  %p128_p0 = scmp.ne.s32.totalorder %s930_s17, %s926_s16 }
   0x6   : > { %p116_p1 = scmp.eq.s32.totalorder %s115_s23, 0  ;;  %p129_p2 = scmp.eq.s32.totalorder %s985_s19, 3 }
   0x7   : > { %p134_p3 = scmp.ne.s32.totalorder %s926_s16, %s922_s15  ;;  %p135_p4 = scmp.eq.s32.totalorder %s745_s20, 3 }
   0x8   : > { %s1000_s24 = scalar_select %p116_p1, %s930_s17, %s118_s22  }
   0x9   : > { %p1002_p5 = por %p129_p2, %p128_p0  ;;  %p1006_p6 = por %p135_p4, %p134_p3 }
   0xa   : > { %p748_p7 = scmp.ge.s32.totalorder %s934_s18, 1  ;;  %p173_p8 = scmp.lt.s32.totalorder %s934_s18, 5 }
   0xc   : > { %p174_p9 = pnand %p748_p7, %p173_p8 }
   0xd   : > { %p202_p10 = scmp.lt.s32.totalorder (!%p174_p9), %s985_s19, 3  ;;  %s764_s20 = sshll.u32 (!%p174_p9), %s985_s19, 7 }
   0xe   : > { %177 = sbr.rel (%p174_p9) target bundleno = 886 (0x376), region = 36  ;;  %s1114_s27 = scalar_lea.hbm (!%p174_p9), %s1153_s4, %s764_s20 }
   0xf   : > { %s938_s6 = smov (!%p174_p9), [#allocation2]  }
  0x13   : > { %v212_v0 = vld [vmem:[%s1151_s2] sm:$0xf]  ;;  %vm233_vm0 = vcmask 1043456   ;;  %v936_v1 = vmov 0.0   ;;  %vm937_vm1 = vmmov 0   ;;  %s1020_s29 = scalar_select %p202_p10, %s985_s19, 3  ;;  %v546_v37 = vlaneseq }
  0x14   : > { %786 = vmatprep.subr.mxu1 %v936_v1  ;;  %788 = vmatprep.mubr.msk.f32.mxu1 %vm937_vm1, %v936_v1  ;;  %vm229_vm2 = vcmask 31744   ;;  %v220_v2 = vld [vmem:[%s1151_s2 + $0x28] sm:$0xff]  ;;  %v219_v4 = vld [vmem:[%s1151_s2 + $0x20] sm:$0xff]  ;;  %v218_v5 = vld [vmem:[%s1151_s2 + $0x18] sm:$0xff]  ;;  %vm312_vm3 = vcmask 261120   ;;  %vm472_vm4 = vcmask 1041408  }
  0x15   : > { %787 = vmatpush3.msk.msra.mxu1 %vm233_vm0, %v212_v0  ;;  %802 = vmatprep.subr.mxu0 %v936_v1  ;;  %s750_s30 = sshll.u32 %s1020_s29, 3  ;;  %v217_v6 = vld [vmem:[%s1151_s2 + $0x10] sm:$0xff]  ;;  %v752_v7 = vld [vmem:[%s1151_s2 + $0x6] ss:$0 sm:$0xff]  ;;  %v224_v12 = vld [vmem:[%s1151_s2 + $0x48] sm:$0xff]  ;;  %vm468_vm5 = vcmask 15360  }
  0x16   : > { %791 = vmatprep.subr.mxu1 %v936_v1  ;;  %810 = vmatprep.mubr.msk.f32.mxu0 %vm937_vm1, %v936_v1  ;;  %s205_s7 = scalar_lea.vmem %s1149_s0, %s750_s30  ;;  %v223_v13 = vld [vmem:[%s1151_s2 + $0x40] sm:$0xff]  ;;  %v222_v14 = vld [vmem:[%s1151_s2 + $0x38] sm:$0xff]  ;;  %s209_s13 = scalar_lea.vmem %s1150_s1, %s750_s30  ;;  %v221_v16 = vld [vmem:[%s1151_s2 + $0x30] sm:$0xff]  ;;  %v547_v38 = vshrl.u32 %v546_v37, 7  ;;  %v640_v60 = vand.u32 127, %v546_v37 }
  0x17   : > { %v210_v3 = vld [vmem:[%s205_s7] sm:$0xff]  ;;  %803 = vmatpush3.msra.mxu0 %v224_v12  ;;  %v560_v32 = vld [vmem:[%s1152_s3 + $0x18] sm:$0xff]  ;;  %v559_v34 = vld [vmem:[%s1152_s3 + $0x10] sm:$0xff]  ;;  %s878_s19 = sshll.u32 %s938_s6, 4  ;;  %s879_s19 = int_to_ptr.vmem [resolvable:$false] %s878_s19 }
  0x18   : > { %789 = vmatmul.mubr.msk.f32.vlgmr.msra.gmra.mxu1 %vm229_vm2, %v210_v3  ;;  %804 = vmatprep.subr.mxu0 %v936_v1  ;;  %v213_v15 = vld [vmem:[%s1151_s2 + $0x4] sm:$0x3]  ;;  %v755_v18 = vld [vmem:[%s1151_s2 + $0x7] ss:$0 sm:$0xff]  ;;  %v558_v35 = vld [vmem:[%s1152_s3 + $0x8] sm:$0xff]  ;;  %v548_v39 = vsub.s32 0, %v547_v38 }
  0x19   : > { %792 = vmatpush3.msra.mxu1 %v220_v2  ;;  %799 = vmatprep.mubr.msk.f32.mxu1 %vm937_vm1, %v936_v1  ;;  %v211_v17 = vld [vmem:[%s209_s13] sm:$0xff]  ;;  %v760_v42 = vld [vmem:[%s1151_s2 + $0x8] ss:$0 sm:$0xff]  ;;  %s199_s13 = sand.u32 1, %s926_s16   ;;  %vm657_vm7 = vcmp.ge.s32.totalorder %v640_v60, 2  ;;  %s880_s7 = scalar_lea.vmem %s879_s19, 256 }
  0x1a   : > { %793 = vmatprep.subr.mxu1 %v936_v1  ;;  %805 = vmatpush3.msra.mxu0 %v223_v13  ;;  %v557_v36 = vld [vmem:[%s1152_s3] sm:$0xff]  ;;  %s749_s14 = sshll.u32 %s199_s13, 3  ;;  %s661_s28 = scalar_lea.sflag [#allocation3], %s199_s13 }
  0x1b   : > { %794 = vmatpush3.msra.mxu1 %v219_v4  ;;  %806 = vmatprep.subr.mxu0 %v936_v1  ;;  %v761_v47 = vld [vmem:[%s1152_s3 + $0x20] ss:$0 sm:$0xff]  ;;  %s201_s29 = scalar_lea.vmem [#allocation2], %s749_s14 }
  0x1c   : > { %795 = vmatprep.subr.mxu1 %v936_v1  ;;  %807 = vmatpush3.msra.mxu0 %v222_v14  ;;  %s674_s22 = sshll.u32 %s201_s29, 4  ;;  %s675_s22 = int_to_ptr.vmem [resolvable:$true] %s674_s22 }
  0x1d   : > { %796 = vmatpush3.msra.mxu1 %v218_v5  ;;  %808 = vmatprep.subr.mxu0 %v936_v1  ;;  %s874_s5 = scalar_lea.vmem %s675_s22, 128  ;;  %p881_p0 = scmp.lt.s32.totalorder %s675_s22, %s879_s19 }
  0x1e   : > { %797 = vmatprep.subr.mxu1 %v936_v1  ;;  %809 = vmatpush3.msra.mxu0 %v221_v16  ;;  %p875_p11 = scmp.ne.s32.totalorder %s675_s22, %s874_s5  ;;  %p882_p1 = scmp.lt.s32.totalorder %s880_s7, %s874_s5 }
  0x1f   : > { %798 = vmatpush3.msra.mxu1 %v217_v6  ;;  %818 = vmatprep.subr.mxu0 %v936_v1 }
  0x20   : > { %813 = vmatprep.subr.mxu1 %v936_v1  ;;  %p876_p12 = pnand %p875_p11, %p1002_p5  ;;  %p883_p2 = por %p882_p1, %p881_p0 }
  0x22   : > { %p877_p13 = pneg %p876_p12 }
  0x24   : > { %p884_p3 = pnand %p883_p2, %p877_p13 }
  0xd8   : > { %v303_v8 = vpop.f32.mrf.mxu1 }
  0xd9   : > { %v304_v9 = vadd.f32 %v752_v7, %v303_v8 }
  0xda   : > { %v790_v10 = vpop.f32.mrf.mxu1 }
  0xdb   : > { %v307_v11 = vmax.f32 %v304_v9, 0.0 }
  0xdd   : > { %800 = vmatmul.mubr.msk.f32.vlgmr.msra.gmra.mxu1 %vm312_vm3, %v307_v11 }
  0xde   : > { %815 = vmatprep.mubr.msk.f32.mxu1 %vm937_vm1, %v936_v1  ;;  %814 = vmatpush3.msk.msra.mxu1 %vm472_vm4, %v213_v15 }
  0xe1   : > { %816 = vmatmul.mubr.msk.f32.vlgmr.msra.gmra.mxu1 %vm468_vm5, %v211_v17 }
 0x19d   : > { %v382_v19 = vpop.f32.mrf.mxu1 }
 0x19e   : > { %v383_v20 = vadd.f32 %v755_v18, %v382_v19 }
 0x19f   : > { %v801_v21 = vpop.f32.mrf.mxu1 }
 0x1a0   : > { %v386_v22 = vmax.f32 %v383_v20, 0.0 }
 0x1a1   : > { %v542_v31 = vpop.f32.mrf.mxu1 }
 0x1a2   : > { %v387_v23 = vsel %vm312_vm3, %v386_v22, 0.0 }
 0x1a3   : > { %v388_v24 = vrot.slane %v387_v23, 4  ;;  %v817_v33 = vpop.f32.mrf.mxu1 }
 0x1a5   : > { %v389_v25 = vadd.f32 %v388_v24, %v387_v23 }
 0x1a7   : > { %v390_v26 = vrot.slane %v389_v25, 2 }
 0x1a9   : > { %v391_v27 = vadd.f32 %v390_v26, %v389_v25 }
 0x1ab   : > { %v392_v28 = vrot.slane %v391_v27, 1 }
 0x1ad   : > { %v393_v29 = vadd.f32 %v392_v28, %v391_v27 }
 0x1af   : > { %v394_v30 = vmul.f32 0.125, %v393_v29 }
 0x1b1   : > { %811 = vmatmul.mubr.msk.f32.vlgmr.msra.gmra.mxu0 %vm312_vm3, %v394_v30 }
 0x1b2   : > { %826 = vmatprep.mubr.msk.f32.mxu0 %vm937_vm1, %v936_v1  ;;  %819 = vmatpush3.msra.mxu0 %v560_v32 }
 0x1b3   : > { %820 = vmatprep.subr.mxu0 %v936_v1 }
 0x1b4   : > { %821 = vmatpush3.msra.mxu0 %v559_v34 }
 0x1b5   : > { %822 = vmatprep.subr.mxu0 %v936_v1 }
 0x1b6   : > { %823 = vmatpush3.msra.mxu0 %v558_v35 }
 0x1b7   : > { %824 = vmatprep.subr.mxu0 %v936_v1 }
 0x1b8   : > { %825 = vmatpush3.msra.mxu0 %v557_v36 }
 0x271   : > { %v464_v40 = vpop.f32.mrf.mxu0 }
 0x272   : > { %v549_v41 = vrot.slane %v464_v40, %v548_v39 }
 0x273   : > { %v812_v43 = vpop.f32.mrf.mxu0 }
 0x274   : > { %v550_v44 = vadd.f32 %v549_v41, %v542_v31 }
 0x276   : > { %v555_v45 = vadd.f32 %v760_v42, %v550_v44 }
 0x278   : > { %v556_v46 = vmax.f32 %v555_v45, 0.0 }
 0x27a   : > { %827 = vmatmul.mubr.msk.f32.vlgmr.msra.gmra.mxu0 %vm312_vm3, %v556_v46 }
 0x33a   : > { %v635_v48 = vpop.f32.mrf.mxu0 }
 0x33b   : > { %v636_v49 = vadd.f32 %v761_v47, %v635_v48 }
 0x33c   : > { %v828_v50 = vpop.f32.mrf.mxu0 }
 0x33d   : > { %v642_v51 = vand.u32 2147483647, %v636_v49  ;;  %v641_v63 = vmax.f32 %v636_v49, 0.0 }
 0x33f   : > { %v643_v52 = vsub.f32 0.0, %v642_v51 }
 0x341   : > { %v644_v53 = vmul.f32 1.442695, %v643_v52 }
 0x343   : > { %870 = vpow2.f32 %v644_v53 }
 0x350   : > { %v871_v54 = vpop.eup %870 }
 0x351   : > { %v646_v55 = vadd.f32 1.0, %v871_v54  ;;  %v649_v56 = vmul.f32 -0.5, %v871_v54  ;;  %v652_v58 = vand.u32 2147483647, %v871_v54 }
 0x353   : > { %872 = vlog2.f32 %v646_v55  ;;  %v650_v57 = vadd.f32 1.0, %v649_v56  ;;  %vm653_vm6 = vcmp.lt.f32.partialorder %v652_v58, 0.0004427343 }
 0x355   : > { %v651_v62 = vmul.f32 %v871_v54, %v650_v57 }
 0x360   : > { %v873_v59 = vpop.eup %872 }
 0x361   : > { %v648_v61 = vmul.f32 0.6931472, %v873_v59 }
 0x363   : > { %v654_v0 = vsel %vm653_vm6, %v651_v62, %v648_v61 }
 0x364   : > { %v655_v1 = vadd.f32 %v654_v0, %v641_v63 }
 0x366   : > { %v656_v2 = vadd.f32 1e-06, %v655_v1 }
 0x368   : > { %v658_v3 = vsel %vm657_vm7, %v656_v2, %v636_v49 }
 0x369   : > { %659 = vst [vmem:[%s201_s29] sm:$0xff] %v658_v3 }
 0x36a   : > { %887 = shalt.err (!%p884_p3)
}
 0x36b   : > { %s888_s8 = scalar_lea.hbm %s1114_s27, 128  ;;  %s892_s11 = scalar_lea.hbm %s1153_s4, 512 }
 0x36c   : > { %p889_p4 = scmp.ne.s32.totalorder %s1114_s27, %s888_s8  ;;  %p893_p9 = scmp.lt.s32.totalorder %s1114_s27, %s1153_s4 }
 0x36d   : > { %p894_p10 = scmp.lt.s32.totalorder %s892_s11, %s888_s8 }
 0x36e   : > { %p890_p7 = pnand %p889_p4, %p1002_p5 }
 0x36f   : > { %p895_p11 = por %p894_p10, %p893_p9 }
 0x370   : > { %p891_p8 = pneg %p890_p7 }
 0x372   : > { %p896_p12 = pnand %p895_p11, %p891_p8 }
 0x374   : > { %899 = shalt.err (!%p896_p12)
}
 0x375   : > { %829 = dma.vmem_to_hbm [thread:$0]  (%p1002_p5), %s675_s22, 128, %s1114_s27, %s661_s28  }
 0x376 PF: > { %p835_p13 = scmp.ge.s32.totalorder %s934_s18, 2  ;;  %s686_s14 = sand.u32 1, %s922_s15  }
 0x377   : > { %s687_s20 = scalar_lea.sflag [#allocation3], %s686_s14 }
 0x378   : > { %p832_p0 = pnand %p835_p13, %p1006_p6 }
 0x37a   : > { %p833_p1 = pneg %p832_p0 }
 0x37c   : > { %917 = dma.done.wait (%p833_p1), %s687_s20, 128  }
 0x37d   : > { %919 = vsyncadd (%p833_p1), %s687_s20, 4294967168  ;;  %p14_p2 = scmp.ge.s32.totalorder %s989_s21, 6   ;;  %s1156_s15 = smov %s926_s16 }
 0x37e   : > { %s1157_s16 = smov %s930_s17  ;;  %s1158_s17 = smov %s1000_s24 }
 0x37f   : > { %s1159_s18 = smov %s989_s21  ;;  %16 = sbr.rel (!%p14_p2) target bundleno = 3 (0x3), region = 74 }
 0x384   :  { %692 = vsyncpa [#allocation3], 1 }
 0x385   :  { %694 = vsyncpa [#allocation3 + $0x1], 1 }

</bundles_post_ra>
